<compile_context>
chip_gen: v5e
topology: v5e:2x2
jax: 0.10.0
libtpu: 0.0.40
codegen_flags: <defaults>
</compile_context>

<pallas_src>
import functools
import math

import jax
import jax.numpy as jnp
from jax.experimental import pallas as pl
from jax.experimental.pallas import tpu as pltpu


def _round_up(x, m):
    return ((x + m - 1) // m) * m


def _lora_kernel(w_ref, b_ref, a_ref, o_ref, *, tn, single_col_block):
    # delta_W tile = B_tile @ A_strip (MXU, f32 accumulation), fused residual add.
    if single_col_block:
        a_strip = a_ref[...]
    else:
        j = pl.program_id(1)
        start = pl.multiple_of(j * tn, tn)          # tn is a multiple of 128 here
        a_strip = a_ref[:, pl.ds(start, tn)]        # A is VMEM-resident; cheap slice
    delta = jnp.dot(
        b_ref[...],
        a_strip,
        preferred_element_type=jnp.float32,
        precision=jax.lax.Precision.DEFAULT,        # guaranteed single-pass MXU
    )
    o_ref[...] = (w_ref[...].astype(jnp.float32) + delta).astype(o_ref.dtype)


def lora_forward(weight, lora_B, lora_A, *, tm=None, tn=None, alias_weight=False):
    """weight: (out, in); lora_B: (out, r); lora_A: (r, in) -> weight + B @ A."""
    out_f, in_f = weight.shape
    r = lora_A.shape[0]
    assert lora_B.shape == (out_f, r), (lora_B.shape, out_f, r)
    assert lora_A.shape == (r, in_f), (lora_A.shape, r, in_f)
    dtype = weight.dtype
    itemsize = jnp.dtype(dtype).itemsize
    lora_itemsize = jnp.dtype(lora_A.dtype).itemsize

    # --- Rank padding to the dtype-aware sublane granule (cheap, keeps B@A exact).
    granule = 8 * max(1, 4 // lora_itemsize)        # f32 -> 8, bf16 -> 16, int8 -> 32
    r_pad = _round_up(max(r, granule), granule)
    if r_pad != r:
        lora_A = jnp.pad(lora_A, ((0, r_pad - r), (0, 0)))
        lora_B = jnp.pad(lora_B, ((0, 0), (0, r_pad - r)))

    # --- Generation-aware defaults (v5e/v6e: 128 MiB VMEM, v7x: 64 MiB/TC). ------
    try:
        vmem_cap = int(pltpu.get_tpu_info().vmem_capacity_bytes)
    except Exception:  # pragma: no cover - be robust if the query is unavailable
        vmem_cap = 64 << 20
    big_vmem = vmem_cap >= (96 << 20)
    auto_tn = tn is None
    if tm is None:
        tm = 1024 if big_vmem else 512
    if tn is None:
        tn = 2048
    tile_budget = (32 << 20) if big_vmem else (16 << 20)   # W + O, double-buffered

    # --- Tile selection. NO padding of the big weight array (ragged edges are
    #     handled by Pallas masking of edge blocks).
    if tm >= out_f:
        tm = out_f                                   # full extent (any size) is legal
    else:
        tm = max(8, (tm // 8) * 8)                   # partial tiles: sublane-aligned
    if tn >= in_f:
        tn = in_f
    elif auto_tn and 4 * tm * in_f * itemsize <= tile_budget:
        tn = in_f                                    # full-row tiles: contiguous DMA
    else:
        tn = max(128, (tn // 128) * 128)             # partial tiles: lane-aligned

    grid = (pl.cdiv(out_f, tm), pl.cdiv(in_f, tn))   # i outer ("parallel"), j inner

    # --- A is tiny: pad its columns to the column-grid extent (cheap) and keep
    #     it fully VMEM-resident (constant block index -> fetched once).
    n_pad = grid[1] * tn
    if n_pad != in_f:
        lora_A = jnp.pad(lora_A, ((0, 0), (0, n_pad - in_f)))

    # --- VMEM limit derived from the actual working set, with headroom. ----------
    w_tile = tm * tn * itemsize
    need = 2 * w_tile                                 # W, double-buffered
    need += 2 * w_tile                                # O, double-buffered
    need += 2 * tm * r_pad * lora_itemsize            # B tile
    need += 2 * r_pad * n_pad * lora_itemsize         # A (resident)
    vmem_limit = max(int(1.25 * need) + (2 << 20), 16 << 20)
    vmem_limit = min(vmem_limit, int(0.75 * vmem_cap))

    cost = pl.CostEstimate(
        flops=2 * out_f * in_f * r_pad,
        transcendentals=0,
        bytes_accessed=(2 * out_f * in_f * itemsize
                        + out_f * r_pad * lora_itemsize
                        + r_pad * in_f * lora_itemsize),
    )

    extra = {}
    if alias_weight:
        # In-place parametrization: reuse the caller's weight HBM buffer (valid now
        # that the weight is never padded/copied on the way in or out).
        extra["input_output_aliases"] = {0: 0}

    kernel = functools.partial(_lora_kernel, tn=tn, single_col_block=(grid[1] == 1))

    return pl.pallas_call(
        kernel,
        out_shape=jax.ShapeDtypeStruct((out_f, in_f), dtype),
        grid=grid,
        in_specs=[
            pl.BlockSpec((tm, tn), lambda i, j: (i, j)),       # W tile stream (BW consumer)
            pl.BlockSpec((tm, r_pad), lambda i, j: (i, 0)),    # B tile: constant across inner j
            pl.BlockSpec((r_pad, n_pad), lambda i, j: (0, 0)), # A: fully VMEM-resident
        ],
        out_specs=pl.BlockSpec((tm, tn), lambda i, j: (i, j)),
        compiler_params=pltpu.CompilerParams(
            dimension_semantics=("parallel", "parallel"),
            vmem_limit_bytes=vmem_limit,
        ),
        cost_estimate=cost,
        **extra,
    )(weight, lora_B, lora_A)


def init_lora_params(key, weight_shape, lora_rank, dtype=jnp.float32):
    """Deterministic parameter init matching LoRAParametrization.initialize_lora."""
    out_features, in_features = weight_shape
    # nn.init.kaiming_uniform_(lora_A, a=sqrt(5)) -> bound = 1/sqrt(fan_in)
    bound = 1.0 / math.sqrt(in_features)
    lora_A = jax.random.uniform(
        key, (lora_rank, in_features), dtype=dtype, minval=-bound, maxval=bound
    )
    # nn.init.zeros_(lora_B)
    lora_B = jnp.zeros((out_features, lora_rank), dtype=dtype)
    return lora_A, lora_B


def _reference(weight, lora_B, lora_A):
    w = weight.astype(jnp.float32)
    d = lora_B.astype(jnp.float32) @ lora_A.astype(jnp.float32)
    return (w + d).astype(weight.dtype)


if __name__ == "__main__":
    key = jax.random.PRNGKey(0)
    k_w1, k_a1, k_b1, k_w2, k_a2, k_b2, k_w3, k_w4, k_a4, k_b4 = jax.random.split(key, 10)

    # Case 1: tiny full-block path (grid 1x1, rank padded 4 -> 8), auto tiles.
    out_f, in_f, r = 32, 32, 4
    w = jax.random.normal(k_w1, (out_f, in_f), dtype=jnp.float32)
    a = jax.random.normal(k_a1, (r, in_f), dtype=jnp.float32)
    b = jax.random.normal(k_b1, (out_f, r), dtype=jnp.float32)
    out = jax.block_until_ready(lora_forward(w, b, a))
    assert out.shape == (out_f, in_f)
    assert jnp.allclose(out, _reference(w, b, a), atol=1e-5, rtol=1e-5)

    # Case 2: ragged dims with explicit small tiles -> grid (2, 3), edge-block
    # masking + A column padding (300 -> 384) + in-kernel A strip slicing exercised.
    out_f, in_f, r = 200, 300, 4
    w = jax.random.normal(k_w2, (out_f, in_f), dtype=jnp.float32)
    a = jax.random.normal(k_a2, (r, in_f), dtype=jnp.float32)
    b = jax.random.normal(k_b2, (out_f, r), dtype=jnp.float32)
    out = jax.block_until_ready(lora_forward(w, b, a, tm=128, tn=128))
    assert out.shape == (out_f, in_f)
    assert jnp.allclose(out, _reference(w, b, a), atol=1e-5, rtol=1e-5)

    # Case 3: module-faithful init (B = zeros -> forward(weight) == weight).
    out_f, in_f, r = 64, 128, 8
    w = jax.random.normal(k_w3, (out_f, in_f), dtype=jnp.float32)
    lora_A, lora_B = init_lora_params(k_a1, (out_f, in_f), r, dtype=jnp.float32)
    out = jax.block_until_ready(lora_forward(w, lora_B, lora_A))
    assert jnp.allclose(out, w, atol=1e-6, rtol=1e-6)

    # Case 4: bf16 weights/factors (dtype-aware rank granule: 4 -> 16).
    out_f, in_f, r = 128, 256, 4
    w = jax.random.normal(k_w4, (out_f, in_f), dtype=jnp.float32).astype(jnp.bfloat16)
    a = jax.random.normal(k_a4, (r, in_f), dtype=jnp.float32).astype(jnp.bfloat16)
    b = jax.random.normal(k_b4, (out_f, r), dtype=jnp.float32).astype(jnp.bfloat16)
    out = jax.block_until_ready(lora_forward(w, b, a))
    ref = _reference(w, b, a)
    assert out.dtype == jnp.bfloat16
    assert jnp.allclose(out.astype(jnp.float32), ref.astype(jnp.float32),
                        atol=5e-2, rtol=5e-2)

    print("KERNEL_OK")
</pallas_src>

<mosaic_0001>
module attributes {stable_mosaic.version = 11 : i64} {
  func.func @_lora_kernel(%arg0: i32, %arg1: i32, %arg2: memref<32x32xf32, #tpu.memory_space<vmem>>, %arg3: memref<32x8xf32, #tpu.memory_space<vmem>>, %arg4: memref<8x32xf32, #tpu.memory_space<vmem>>, %arg5: memref<32x32xf32, #tpu.memory_space<vmem>>) attributes {dimension_semantics = [#tpu.dimension_semantics<parallel>, #tpu.dimension_semantics<parallel>], iteration_bounds = array<i64: 1, 1>, scalar_prefetch = 0 : i64, scratch_operands = 0 : i64, tpu.core_type = #tpu.core_type<tc>, window_params = [{transform_indices = @transform_0, window_bounds = array<i64: 32, 32>}, {transform_indices = @transform_1, window_bounds = array<i64: 32, 8>}, {pipeline_mode = #tpu.pipeline_mode<synchronous>, transform_indices = @transform_2, window_bounds = array<i64: 8, 32>}, {transform_indices = @transform_3, window_bounds = array<i64: 32, 32>}]} {
    %c0 = arith.constant 0 : index
    %c0_0 = arith.constant 0 : index
    %0 = vector.load %arg4[%c0, %c0_0] : memref<8x32xf32, #tpu.memory_space<vmem>>, vector<8x32xf32>
    %c0_1 = arith.constant 0 : index
    %c0_2 = arith.constant 0 : index
    %1 = vector.load %arg3[%c0_1, %c0_2] : memref<32x8xf32, #tpu.memory_space<vmem>>, vector<32x8xf32>
    %cst = arith.constant dense<0.000000e+00> : vector<32x32xf32>
    %2 = tpu.matmul %1, %0, %cst {dimension_numbers = #tpu.dot_dimension_numbers<[1], [0], [0], [1], [0, 0, 1, 1], [], []>} : vector<32x8xf32>, vector<8x32xf32>, vector<32x32xf32> -> vector<32x32xf32>
    %c0_3 = arith.constant 0 : index
    %c0_4 = arith.constant 0 : index
    %3 = vector.load %arg2[%c0_3, %c0_4] : memref<32x32xf32, #tpu.memory_space<vmem>>, vector<32x32xf32>
    %4 = arith.addf %3, %2 : vector<32x32xf32>
    %c0_5 = arith.constant 0 : index
    %c0_6 = arith.constant 0 : index
    %5 = vector.load %arg5[%c0_5, %c0_6] : memref<32x32xf32, #tpu.memory_space<vmem>>, vector<32x32xf32>
    tpu.vector_store %arg5[%c0_5, %c0_6], %4 {strides = array<i32>} : memref<32x32xf32, #tpu.memory_space<vmem>>, vector<32x32xf32>,
    return
  }
  func.func @transform_0(%arg0: i32, %arg1: i32) -> (i32, i32) {
    %c0_i32 = arith.constant 0 : i32
    return %arg0, %arg1 : i32, i32
  }
  func.func @transform_1(%arg0: i32, %arg1: i32) -> (i32, i32) {
    %c0_i32 = arith.constant 0 : i32
    %c0_i32_0 = arith.constant 0 : i32
    return %arg0, %c0_i32 : i32, i32
  }
  func.func @transform_2(%arg0: i32, %arg1: i32) -> (i32, i32) {
    %c0_i32 = arith.constant 0 : i32
    %c0_i32_0 = arith.constant 0 : i32
    %c0_i32_1 = arith.constant 0 : i32
    return %c0_i32, %c0_i32_0 : i32, i32
  }
  func.func @transform_3(%arg0: i32, %arg1: i32) -> (i32, i32) {
    %c0_i32 = arith.constant 0 : i32
    return %arg0, %arg1 : i32, i32
  }
}

</mosaic_0001>

<bundles_post_ra>
// kernel: tpu_custom_call.1
= control target key start
LH: loop header
LB: loop body
LE: loop exit
PB: predicated region body
PF: predicated region fallthrough
CT: control target
= control target key end

     0   :  { %vm20_vm0 = vcmask 64512   ;;  %s186_s0 = inlined_call_operand.vmem [shape: f32[32,32], index: 0, kind: input, shape index: {}]   ;;  %s187_s1 = inlined_call_operand.vmem [shape: f32[32,8], index: 1, kind: input, shape index: {}]   ;;  %s188_s2 = inlined_call_operand.vmem [shape: f32[8,32], index: 2, kind: input, shape index: {}]   ;;  %s189_s3 = inlined_call_operand.hbm [shape: f32[32,32], index: 3, kind: output, shape index: {}]  }
   0x1   :  { %v15_v0 = vld [vmem:[%s188_s2] sm:$0xff]  ;;  %v18_v1 = vld [vmem:[%s187_s1 + $0x10] sm:$0xff]  ;;  %v19_v2 = vld [vmem:[%s187_s1 + $0x18] sm:$0xff] }
   0x2   :  { %98 = vmatpush.msra.mxu2 %v15_v0  ;;  %99 = vmatpush.msra.mxu3 %v15_v0  ;;  %v16_v3 = vld [vmem:[%s187_s1] sm:$0xff]  ;;  %v17_v4 = vld [vmem:[%s187_s1 + $0x8] sm:$0xff] }
   0x3   :  { %8 = vsyncpa [#allocation3], 0  ;;  %95 = vmatmul.msk.f32.vlgmr.msra.gmra.mxu2 %vm20_vm0, %v18_v1  ;;  %96 = vmatmul.msk.f32.vlgmr.msra.gmra.mxu3 %vm20_vm0, %v19_v2  ;;  %v62_v5 = vld [vmem:[%s186_s0] sm:$0xff]  ;;  %v63_v6 = vld [vmem:[%s186_s0 + $0x8] sm:$0xff]  ;;  %vm70_vm1 = vcmask 261120   ;;  %s129_s28 = smov [#allocation2]  }
   0x4   :  { %48 = vmatpush.msra.mxu0 %v15_v0  ;;  %97 = vmatpush.msra.mxu1 %v15_v0  ;;  %v64_v11 = vld [vmem:[%s186_s0 + $0x10] sm:$0xff]  ;;  %v65_v12 = vld [vmem:[%s186_s0 + $0x18] sm:$0xff]  ;;  %s79_s29 = sshll.u32 %s129_s28, 4  ;;  %s81_s5 = sshll.u32 %s189_s3, 4  ;;  %s80_s29 = int_to_ptr.vmem [resolvable:$true] %s79_s29  ;;  %s82_s5 = int_to_ptr.hbm [resolvable:$true] %s81_s5 }
   0x5   :  { %93 = vmatmul.msk.f32.vlgmr.msra.gmra.mxu0 %vm20_vm0, %v16_v3  ;;  %94 = vmatmul.msk.f32.vlgmr.msra.gmra.mxu1 %vm20_vm0, %v17_v4  ;;  %s130_s0 = smov 128   ;;  %s131_s6 = smov 8  }
  0x82   :  { %v50_v7 = vpop.f32.mrf.mxu0  ;;  %v53_v8 = vpop.f32.mrf.mxu1 }
  0x83   :  { %v66_v9 = vadd.f32 %v62_v5, %v50_v7  ;;  %v67_v10 = vadd.f32 %v63_v6, %v53_v8 }
  0x85   :  { %71 = vst.msk [vmem:[#allocation2] sm:$0xff] %vm70_vm1, %v66_v9 }
  0x86   :  { %72 = vst.msk [vmem:[#allocation2 + $0x8] sm:$0xff] %vm70_vm1, %v67_v10  ;;  %v56_v13 = vpop.f32.mrf.mxu2  ;;  %v59_v14 = vpop.f32.mrf.mxu3 }
  0x87   :  { %v68_v15 = vadd.f32 %v64_v11, %v56_v13  ;;  %v69_v16 = vadd.f32 %v65_v12, %v59_v14 }
  0x89   :  { %73 = vst.msk [vmem:[#allocation2 + $0x10] sm:$0xff] %vm70_vm1, %v68_v15 }
  0x8a   :  { %74 = vst.msk [vmem:[#allocation2 + $0x18] sm:$0xff] %vm70_vm1, %v69_v16 }
  0x8b   :  { %87 = dma.vmem_to_hbm [thread:$0]  %s80_s29, 512, %s82_s5, [#allocation3], %s130_s0, %s130_s0, %s131_s6  }
  0x8c   :  { %127 = dma.done.wait [#allocation3], 512  }
  0x8d   :  { %128 = vsyncadd [#allocation3], 4294966784 }
  0x8e   :  { %92 = vsyncpa [#allocation3], 1 }

</bundles_post_ra>
